<compile_context>
chip_gen: v6e
topology: v6e:2x2x1
jax: 0.10.0
libtpu: 0.0.40
codegen_flags: <defaults>
</compile_context>

<pallas_src>
import jax
import jax.numpy as jnp
from jax.experimental import pallas as pl
from jax.experimental.pallas import tpu as pltpu

LANE = 128      # lane width of a vreg
SUBLANE = 8     # sublane count of a vreg


def _round_up(x, m):
    return (x + m - 1) // m * m


def qnetwork_kernel(x_ref, w1_ref, w2_ref, w3_ref, o_ref):
    # fc1 + ReLU
    h1 = jnp.dot(x_ref[...], w1_ref[...], preferred_element_type=jnp.float32)
    h1 = jnp.maximum(h1, 0.0)
    # fc2 + ReLU
    h2 = jnp.dot(h1, w2_ref[...], preferred_element_type=jnp.float32)
    h2 = jnp.maximum(h2, 0.0)
    # fc3 (no activation) -> lane-dense (padded) output slab
    out = jnp.dot(h2, w3_ref[...], preferred_element_type=jnp.float32)
    o_ref[...] = out.astype(o_ref.dtype)


def _pad_weights(w1, w2, w3):
    """Zero-pad hidden / action dims up to multiples of 128 (lane-dense).

    Zero padding is exact for this network: padded hidden columns produce 0,
    ReLU(0) = 0, and the corresponding padded weight rows are 0, so padded
    lanes contribute nothing to the real outputs.
    """
    S, H1 = w1.shape
    _, H2 = w2.shape
    _, A = w3.shape
    H1P, H2P, AP = _round_up(H1, LANE), _round_up(H2, LANE), _round_up(A, LANE)
    w1p = jnp.zeros((S, H1P), jnp.float32).at[:, :H1].set(w1)
    w2p = jnp.zeros((H1P, H2P), jnp.float32).at[:H1, :H2].set(w2)
    w3p = jnp.zeros((H2P, AP), jnp.float32).at[:H2, :A].set(w3)
    return w1p, w2p, w3p


def qnetwork_forward(state, w1, w2, w3, *, tile_b=1024):
    """Fused forward pass.

    state: (B, state_size) float32
    w1:    (state_size, hidden1)   -- pre-transposed fc1.weight
    w2:    (hidden1, hidden2)      -- pre-transposed fc2.weight
    w3:    (hidden2, action_size)  -- pre-transposed fc3.weight
    returns (B, action_size) float32
    """
    B, S = state.shape
    A = w3.shape[1]

    w1p, w2p, w3p = _pad_weights(w1, w2, w3)
    AP = w3p.shape[1]

    if B < tile_b:
        # --- small-batch path: single block, no grid (no pipeline overhead) ---
        Bp = _round_up(max(B, 1), SUBLANE)
        xp = state if Bp == B else jnp.zeros((Bp, S), state.dtype).at[:B].set(state)
        out = pl.pallas_call(
            qnetwork_kernel,
            out_shape=jax.ShapeDtypeStruct((Bp, AP), jnp.float32),
            in_specs=[pl.BlockSpec(memory_space=pltpu.MemorySpace.VMEM)] * 4,
            out_specs=pl.BlockSpec(memory_space=pltpu.MemorySpace.VMEM),
        )(xp, w1p, w2p, w3p)
        return out[:B, :A]

    # --- large-batch path: tile the batch; weights stay resident in VMEM ---
    Bp = _round_up(B, tile_b)
    xp = state if Bp == B else jnp.zeros((Bp, S), state.dtype).at[:B].set(state)
    out = pl.pallas_call(
        qnetwork_kernel,
        out_shape=jax.ShapeDtypeStruct((Bp, AP), jnp.float32),
        grid_spec=pltpu.PrefetchScalarGridSpec(
            num_scalar_prefetch=0,
            grid=(Bp // tile_b,),
            in_specs=[
                pl.BlockSpec((tile_b, S), lambda i: (i, 0)),     # batch tile
                pl.BlockSpec(w1p.shape, lambda i: (0, 0)),       # resident
                pl.BlockSpec(w2p.shape, lambda i: (0, 0)),       # resident
                pl.BlockSpec(w3p.shape, lambda i: (0, 0)),       # resident
            ],
            out_specs=pl.BlockSpec((tile_b, AP), lambda i: (i, 0)),
        ),
        compiler_params=pltpu.CompilerParams(
            # batch tiles are independent -> shard across v7x's 2 TensorCores
            dimension_semantics=("parallel",),
            # TILE_B=1024 needs ~1.2 MiB double-buffered; 16 MiB fits v5e too.
            vmem_limit_bytes=16 * 1024 * 1024,
        ),
    )(xp, w1p, w2p, w3p)
    return out[:B, :A]


def init_qnetwork_params(key, state_size, action_size, layers=(64, 64)):
    """Deterministic parameter init (uniform, PyTorch-Linear-style bound).

    Returned weights are already transposed to (in_features, out_features).
    The reference module uses bias=False, so there are no bias terms.
    """
    k1, k2, k3 = jax.random.split(key, 3)

    def linear_w(k, fan_in, fan_out):
        bound = 1.0 / jnp.sqrt(fan_in)
        return jax.random.uniform(
            k, (fan_in, fan_out), dtype=jnp.float32, minval=-bound, maxval=bound
        )

    w1 = linear_w(k1, state_size, layers[0])
    w2 = linear_w(k2, layers[0], layers[1])
    w3 = linear_w(k3, layers[1], action_size)
    return w1, w2, w3


def qnetwork_reference(state, w1, w2, w3):
    h1 = jnp.maximum(state @ w1, 0.0)
    h2 = jnp.maximum(h1 @ w2, 0.0)
    return h2 @ w3


if __name__ == "__main__":
    key = jax.random.PRNGKey(0)
    k_params, k_state_small, k_state_big = jax.random.split(key, 3)

    state_size = 8
    action_size = 4
    layers = (64, 64)

    w1, w2, w3 = init_qnetwork_params(k_params, state_size, action_size, layers)

    # --- small-batch (no-grid) path ---
    batch = 2
    state = jax.random.normal(k_state_small, (batch, state_size), dtype=jnp.float32)
    out = jax.block_until_ready(qnetwork_forward(state, w1, w2, w3))
    ref = qnetwork_reference(state, w1, w2, w3)
    assert out.shape == (batch, action_size)
    assert jnp.allclose(out, ref, atol=1e-5, rtol=1e-5)

    # --- large-batch (tiled, weights-resident) path ---
    big_batch = 2048
    big_state = jax.random.normal(
        k_state_big, (big_batch, state_size), dtype=jnp.float32
    )
    big_out = jax.block_until_ready(qnetwork_forward(big_state, w1, w2, w3))
    big_ref = qnetwork_reference(big_state, w1, w2, w3)
    assert big_out.shape == (big_batch, action_size)
    assert jnp.allclose(big_out, big_ref, atol=1e-5, rtol=1e-5)

    print("KERNEL_OK")
</pallas_src>

<mosaic_0001>
module attributes {stable_mosaic.version = 11 : i64} {
  func.func @qnetwork_kernel(%arg0: memref<8x8xf32, #tpu.memory_space<vmem>>, %arg1: memref<8x128xf32, #tpu.memory_space<vmem>>, %arg2: memref<128x128xf32, #tpu.memory_space<vmem>>, %arg3: memref<128x128xf32, #tpu.memory_space<vmem>>, %arg4: memref<8x128xf32, #tpu.memory_space<vmem>>) attributes {dimension_semantics = [], scalar_prefetch = 0 : i64, scratch_operands = 0 : i64, tpu.core_type = #tpu.core_type<tc>} {
    %c0 = arith.constant 0 : index
    %c0_0 = arith.constant 0 : index
    %0 = vector.load %arg0[%c0, %c0_0] : memref<8x8xf32, #tpu.memory_space<vmem>>, vector<8x8xf32>
    %c0_1 = arith.constant 0 : index
    %c0_2 = arith.constant 0 : index
    %1 = vector.load %arg1[%c0_1, %c0_2] : memref<8x128xf32, #tpu.memory_space<vmem>>, vector<8x128xf32>
    %cst = arith.constant dense<0.000000e+00> : vector<8x128xf32>
    %2 = tpu.matmul %0, %1, %cst {dimension_numbers = #tpu.dot_dimension_numbers<[1], [0], [0], [1], [0, 0, 1, 1], [], []>} : vector<8x8xf32>, vector<8x128xf32>, vector<8x128xf32> -> vector<8x128xf32>
    %cst_3 = arith.constant 0.000000e+00 : f32
    %3 = vector.broadcast %cst_3 : f32 to vector<8x128xf32>
    %4 = arith.maximumf %2, %3 : vector<8x128xf32>
    %c0_4 = arith.constant 0 : index
    %c0_5 = arith.constant 0 : index
    %5 = vector.load %arg2[%c0_4, %c0_5] : memref<128x128xf32, #tpu.memory_space<vmem>>, vector<128x128xf32>
    %cst_6 = arith.constant dense<0.000000e+00> : vector<8x128xf32>
    %6 = tpu.matmul %4, %5, %cst_6 {dimension_numbers = #tpu.dot_dimension_numbers<[1], [0], [0], [1], [0, 0, 1, 1], [], []>} : vector<8x128xf32>, vector<128x128xf32>, vector<8x128xf32> -> vector<8x128xf32>
    %cst_7 = arith.constant 0.000000e+00 : f32
    %7 = vector.broadcast %cst_7 : f32 to vector<8x128xf32>
    %8 = arith.maximumf %6, %7 : vector<8x128xf32>
    %c0_8 = arith.constant 0 : index
    %c0_9 = arith.constant 0 : index
    %9 = vector.load %arg3[%c0_8, %c0_9] : memref<128x128xf32, #tpu.memory_space<vmem>>, vector<128x128xf32>
    %cst_10 = arith.constant dense<0.000000e+00> : vector<8x128xf32>
    %10 = tpu.matmul %8, %9, %cst_10 {dimension_numbers = #tpu.dot_dimension_numbers<[1], [0], [0], [1], [0, 0, 1, 1], [], []>} : vector<8x128xf32>, vector<128x128xf32>, vector<8x128xf32> -> vector<8x128xf32>
    %c0_11 = arith.constant 0 : index
    %c0_12 = arith.constant 0 : index
    %11 = vector.load %arg4[%c0_11, %c0_12] : memref<8x128xf32, #tpu.memory_space<vmem>>, vector<8x128xf32>
    tpu.vector_store %arg4[%c0_11, %c0_12], %10 {strides = array<i32>} : memref<8x128xf32, #tpu.memory_space<vmem>>, vector<8x128xf32>,
    return
  }
}

</mosaic_0001>

<bundles_post_ra>
// kernel: tpu_custom_call.1
= control target key start
LH: loop header
LB: loop body
LE: loop exit
PB: predicated region body
PF: predicated region fallthrough
CT: control target
= control target key end

     0   :  { %9 = vsyncpa [#allocation3], 0  ;;  %s654_s0 = inlined_call_operand.hbm [shape: f32[8,8], index: 0, kind: input, shape index: {}]   ;;  %s655_s1 = inlined_call_operand.hbm [shape: f32[8,128], index: 1, kind: input, shape index: {}]   ;;  %s656_s2 = inlined_call_operand.hbm [shape: f32[128,128], index: 2, kind: input, shape index: {}]   ;;  %s657_s3 = inlined_call_operand.hbm [shape: f32[128,128], index: 3, kind: input, shape index: {}]   ;;  %s658_s4 = inlined_call_operand.hbm [shape: f32[8,128], index: 4, kind: output, shape index: {}]  }
   0x1   :  { %10 = vsyncpa [#allocation6], 0 }
   0x2   :  { %11 = vsyncpa [#allocation9], 0 }
   0x3   :  { %12 = vsyncpa [#allocation4], 0  ;;  %s566_s15 = smov [#allocation5]   ;;  %s567_s17 = smov [#allocation2]  }
   0x4   :  { %s29_s16 = sshll.u32 %s566_s15, 4  ;;  %s19_s18 = sshll.u32 %s567_s17, 4  ;;  %s30_s16 = int_to_ptr.vmem [resolvable:$true] %s29_s16  ;;  %s20_s18 = int_to_ptr.vmem [resolvable:$true] %s19_s18 }
   0x5   :  { %s466_s19 = scalar_lea.vmem %s30_s16, 128  ;;  %p471_p1 = scmp.lt.s32.totalorder %s30_s16, %s30_s16 }
   0x6   :  { %p467_p0 = scmp.ne.s32.totalorder %s30_s16, %s466_s19  ;;  %p472_p2 = scmp.lt.s32.totalorder %s466_s19, %s466_s19 }
   0x8   :  { %p473_p3 = por %p472_p2, %p471_p1 }
   0xa   :  { %p474_p4 = pnand %p473_p3, %p467_p0 }
   0xc   :  { %477 = shalt.err (!%p474_p4)
}
   0xd   :  { %32 = dma.hbm_to_vmem [thread:$0]  %s655_s1, 128, %s30_s16, [#allocation6]  }
   0xe   :  { %s486_s22 = scalar_lea.vmem %s20_s18, 128  ;;  %p491_p6 = scmp.lt.s32.totalorder %s20_s18, %s20_s18 }
   0xf   :  { %p487_p5 = scmp.ne.s32.totalorder %s20_s18, %s486_s22  ;;  %p492_p7 = scmp.lt.s32.totalorder %s486_s22, %s486_s22 }
  0x11   :  { %p493_p8 = por %p492_p7, %p491_p6 }
  0x13   :  { %p494_p9 = pnand %p493_p8, %p487_p5 }
  0x15   :  { %497 = shalt.err (!%p494_p9)
}
  0x16   :  { %22 = dma.hbm_to_vmem [thread:$0]  %s654_s0, 128, %s20_s18, [#allocation3]  }
  0x17   :  { %s568_s25 = smov [#allocation7]  }
  0x18   :  { %s38_s26 = sshll.u32 %s568_s25, 4  ;;  %s39_s26 = int_to_ptr.vmem [resolvable:$true] %s38_s26 }
  0x19   :  { %s506_s27 = scalar_lea.vmem %s39_s26, 2048  ;;  %p511_p11 = scmp.lt.s32.totalorder %s39_s26, %s39_s26 }
  0x1a   :  { %p507_p10 = scmp.ne.s32.totalorder %s39_s26, %s506_s27  ;;  %p512_p12 = scmp.lt.s32.totalorder %s506_s27, %s506_s27 }
  0x1c   :  { %p513_p13 = por %p512_p12, %p511_p11 }
  0x1e   :  { %p514_p0 = pnand %p513_p13, %p507_p10 }
  0x20   :  { %517 = shalt.err (!%p514_p0)
}
  0x21   :  { %s569_s1 = smov 128   ;;  %s570_s28 = smov 8  }
  0x22   :  { %44 = dma.hbm_to_vmem [thread:$0]  %s656_s2, 2048, %s39_s26, [#allocation6], %s569_s1, %s569_s1, %s570_s28  }
  0x23   :  { %s571_s5 = smov [#allocation8]  }
  0x24   :  { %s50_s6 = sshll.u32 %s571_s5, 4  ;;  %s51_s6 = int_to_ptr.vmem [resolvable:$true] %s50_s6 }
  0x25   :  { %s526_s0 = scalar_lea.vmem %s51_s6, 2048  ;;  %p531_p2 = scmp.lt.s32.totalorder %s51_s6, %s51_s6 }
  0x26   :  { %p527_p1 = scmp.ne.s32.totalorder %s51_s6, %s526_s0  ;;  %p532_p3 = scmp.lt.s32.totalorder %s526_s0, %s526_s0 }
  0x28   :  { %p533_p4 = por %p532_p3, %p531_p2 }
  0x2a   :  { %p534_p5 = pnand %p533_p4, %p527_p1 }
  0x2c   :  { %537 = shalt.err (!%p534_p5)
}
  0x2d   :  { %56 = dma.hbm_to_vmem [thread:$0]  %s657_s3, 2048, %s51_s6, [#allocation9], %s569_s1, %s569_s1, %s570_s28  }
  0x2e   :  { %558 = dma.done.wait [#allocation3], 128  }
  0x2f   :  { %559 = vsyncadd [#allocation3], 4294967168 }
  0x30   :  { %560 = dma.done.wait [#allocation6], 2176  }
  0x31   :  { %561 = vsyncadd [#allocation6], 4294965120 }
  0x32   :  { %562 = dma.done.wait [#allocation9], 2048  }
  0x33   :  { %563 = vsyncadd [#allocation9], 4294965248  ;;  %v572_v0 = vmov 0.0   ;;  %vm573_vm0 = vmmov 0   ;;  %vm71_vm1 = vcmask 64512   ;;  %v70_v1 = vld [vmem:[#allocation5] sm:$0xff] }
  0x34   :  { %374 = vmatprep.subr.mxu0 %v572_v0  ;;  %376 = vmatprep.mubr.msk.f32.mxu0 %vm573_vm0, %v572_v0  ;;  %v69_v2 = vld [vmem:[#allocation2] sm:$0xff]  ;;  %v161_v3 = vld [vmem:[#allocation7 + $0x78] sm:$0xff]  ;;  %v159_v5 = vld [vmem:[#allocation7 + $0x68] sm:$0xff]  ;;  %s574_s2 = smov [#allocation10]  }
  0x35   :  { %379 = vmatprep.subr.mxu1 %v572_v0  ;;  %411 = vmatprep.mubr.msk.f32.mxu1 %vm573_vm0, %v572_v0  ;;  %v160_v4 = vld [vmem:[#allocation7 + $0x70] sm:$0xff]  ;;  %v158_v6 = vld [vmem:[#allocation7 + $0x60] sm:$0xff]  ;;  %v157_v7 = vld [vmem:[#allocation7 + $0x58] sm:$0xff]  ;;  %s326_s3 = sshll.u32 %s574_s2, 4  ;;  %s327_s3 = int_to_ptr.vmem [resolvable:$true] %s326_s3 }
  0x36   :  { %375 = vmatpush3.msra.mxu0 %v70_v1  ;;  %380 = vmatpush3.msra.mxu1 %v161_v3  ;;  %v156_v8 = vld [vmem:[#allocation7 + $0x50] sm:$0xff]  ;;  %v155_v9 = vld [vmem:[#allocation7 + $0x48] sm:$0xff]  ;;  %v154_v10 = vld [vmem:[#allocation7 + $0x40] sm:$0xff]  ;;  %s538_s9 = scalar_lea.vmem %s327_s3, 128  ;;  %p543_p7 = scmp.lt.s32.totalorder %s327_s3, %s327_s3 }
  0x37   :  { %377 = vmatmul.mubr.msk.f32.vlgmr.msra.gmra.mxu0 %vm71_vm1, %v69_v2  ;;  %381 = vmatprep.subr.mxu1 %v572_v0  ;;  %v153_v11 = vld [vmem:[#allocation7 + $0x38] sm:$0xff]  ;;  %v152_v12 = vld [vmem:[#allocation7 + $0x30] sm:$0xff]  ;;  %v151_v13 = vld [vmem:[#allocation7 + $0x28] sm:$0xff]  ;;  %p539_p6 = scmp.ne.s32.totalorder %s327_s3, %s538_s9  ;;  %p544_p8 = scmp.lt.s32.totalorder %s538_s9, %s538_s9 }
  0x38   :  { %382 = vmatpush3.msra.mxu1 %v160_v4  ;;  %414 = vmatprep.subr.mxu0 %v572_v0  ;;  %v150_v14 = vld [vmem:[#allocation7 + $0x20] sm:$0xff]  ;;  %v149_v15 = vld [vmem:[#allocation7 + $0x18] sm:$0xff]  ;;  %v148_v16 = vld [vmem:[#allocation7 + $0x10] sm:$0xff] }
  0x39   :  { %383 = vmatprep.subr.mxu1 %v572_v0  ;;  %446 = vmatprep.mubr.msk.f32.mxu0 %vm573_vm0, %v572_v0  ;;  %v147_v17 = vld [vmem:[#allocation7 + $0x8] sm:$0xff]  ;;  %v146_v18 = vld [vmem:[#allocation7] sm:$0xff]  ;;  %v248_v19 = vld [vmem:[#allocation8 + $0x78] sm:$0xff]  ;;  %p545_p9 = por %p544_p8, %p543_p7 }
  0x3a   :  { %384 = vmatpush3.msra.mxu1 %v159_v5  ;;  %v247_v20 = vld [vmem:[#allocation8 + $0x70] sm:$0xff]  ;;  %415 = vmatpush3.msra.mxu0 %v248_v19  ;;  %v246_v21 = vld [vmem:[#allocation8 + $0x68] sm:$0xff]  ;;  %v245_v22 = vld [vmem:[#allocation8 + $0x60] sm:$0xff] }
  0x3b   :  { %385 = vmatprep.subr.mxu1 %v572_v0  ;;  %416 = vmatprep.subr.mxu0 %v572_v0  ;;  %v244_v23 = vld [vmem:[#allocation8 + $0x58] sm:$0xff]  ;;  %v243_v24 = vld [vmem:[#allocation8 + $0x50] sm:$0xff]  ;;  %v242_v25 = vld [vmem:[#allocation8 + $0x48] sm:$0xff]  ;;  %p546_p10 = pnand %p545_p9, %p539_p6 }
  0x3c   :  { %386 = vmatpush3.msra.mxu1 %v158_v6  ;;  %417 = vmatpush3.msra.mxu0 %v247_v20  ;;  %v241_v26 = vld [vmem:[#allocation8 + $0x40] sm:$0xff]  ;;  %v240_v27 = vld [vmem:[#allocation8 + $0x38] sm:$0xff]  ;;  %v239_v28 = vld [vmem:[#allocation8 + $0x30] sm:$0xff] }
  0x3d   :  { %387 = vmatprep.subr.mxu1 %v572_v0  ;;  %418 = vmatprep.subr.mxu0 %v572_v0  ;;  %v238_v29 = vld [vmem:[#allocation8 + $0x28] sm:$0xff]  ;;  %v237_v30 = vld [vmem:[#allocation8 + $0x20] sm:$0xff]  ;;  %v236_v31 = vld [vmem:[#allocation8 + $0x18] sm:$0xff] }
  0x3e   :  { %388 = vmatpush3.msra.mxu1 %v157_v7  ;;  %419 = vmatpush3.msra.mxu0 %v246_v21  ;;  %v235_v32 = vld [vmem:[#allocation8 + $0x10] sm:$0xff]  ;;  %v234_v36 = vld [vmem:[#allocation8 + $0x8] sm:$0xff]  ;;  %v233_v37 = vld [vmem:[#allocation8] sm:$0xff] }
  0x3f   :  { %389 = vmatprep.subr.mxu1 %v572_v0  ;;  %420 = vmatprep.subr.mxu0 %v572_v0 }
  0x40   :  { %390 = vmatpush3.msra.mxu1 %v156_v8  ;;  %421 = vmatpush3.msra.mxu0 %v245_v22 }
  0x41   :  { %391 = vmatprep.subr.mxu1 %v572_v0  ;;  %422 = vmatprep.subr.mxu0 %v572_v0 }
  0x42   :  { %392 = vmatpush3.msra.mxu1 %v155_v9  ;;  %423 = vmatpush3.msra.mxu0 %v244_v23 }
  0x43   :  { %393 = vmatprep.subr.mxu1 %v572_v0  ;;  %424 = vmatprep.subr.mxu0 %v572_v0 }
  0x44   :  { %394 = vmatpush3.msra.mxu1 %v154_v10  ;;  %425 = vmatpush3.msra.mxu0 %v243_v24 }
  0x45   :  { %395 = vmatprep.subr.mxu1 %v572_v0  ;;  %426 = vmatprep.subr.mxu0 %v572_v0 }
  0x46   :  { %396 = vmatpush3.msra.mxu1 %v153_v11  ;;  %427 = vmatpush3.msra.mxu0 %v242_v25 }
  0x47   :  { %397 = vmatprep.subr.mxu1 %v572_v0  ;;  %428 = vmatprep.subr.mxu0 %v572_v0 }
  0x48   :  { %398 = vmatpush3.msra.mxu1 %v152_v12  ;;  %429 = vmatpush3.msra.mxu0 %v241_v26 }
  0x49   :  { %399 = vmatprep.subr.mxu1 %v572_v0  ;;  %430 = vmatprep.subr.mxu0 %v572_v0 }
  0x4a   :  { %400 = vmatpush3.msra.mxu1 %v151_v13  ;;  %431 = vmatpush3.msra.mxu0 %v240_v27 }
  0x4b   :  { %401 = vmatprep.subr.mxu1 %v572_v0  ;;  %432 = vmatprep.subr.mxu0 %v572_v0 }
  0x4c   :  { %402 = vmatpush3.msra.mxu1 %v150_v14  ;;  %433 = vmatpush3.msra.mxu0 %v239_v28 }
  0x4d   :  { %403 = vmatprep.subr.mxu1 %v572_v0  ;;  %434 = vmatprep.subr.mxu0 %v572_v0 }
  0x4e   :  { %404 = vmatpush3.msra.mxu1 %v149_v15  ;;  %435 = vmatpush3.msra.mxu0 %v238_v29 }
  0x4f   :  { %405 = vmatprep.subr.mxu1 %v572_v0  ;;  %436 = vmatprep.subr.mxu0 %v572_v0 }
  0x50   :  { %406 = vmatpush3.msra.mxu1 %v148_v16  ;;  %437 = vmatpush3.msra.mxu0 %v237_v30 }
  0x51   :  { %407 = vmatprep.subr.mxu1 %v572_v0  ;;  %438 = vmatprep.subr.mxu0 %v572_v0 }
  0x52   :  { %408 = vmatpush3.msra.mxu1 %v147_v17  ;;  %439 = vmatpush3.msra.mxu0 %v236_v31 }
  0x53   :  { %409 = vmatprep.subr.mxu1 %v572_v0  ;;  %440 = vmatprep.subr.mxu0 %v572_v0 }
  0x54   :  { %410 = vmatpush3.msra.mxu1 %v146_v18  ;;  %441 = vmatpush3.msra.mxu0 %v235_v32 }
  0x55   :  { %442 = vmatprep.subr.mxu0 %v572_v0 }
  0x56   :  { %443 = vmatpush3.msra.mxu0 %v234_v36 }
  0x57   :  { %444 = vmatprep.subr.mxu0 %v572_v0 }
  0x58   :  { %445 = vmatpush3.msra.mxu0 %v233_v37 }
  0xf7   :  { %v141_v33 = vpop.f32.mrf.mxu0 }
  0xf8   :  { %v145_v34 = vmax.f32 %v141_v33, 0.0 }
  0xf9   :  { %v378_v35 = vpop.f32.mrf.mxu0 }
  0xfa   :  { %412 = vmatmul.mubr.f32.vlgmr.msra.gmra.mxu1 %v145_v34 }
 0x1ba   :  { %v228_v38 = vpop.f32.mrf.mxu1 }
 0x1bb   :  { %v232_v39 = vmax.f32 %v228_v38, 0.0 }
 0x1bc   :  { %v413_v40 = vpop.f32.mrf.mxu1 }
 0x1bd   :  { %447 = vmatmul.mubr.f32.vlgmr.msra.gmra.mxu0 %v232_v39 }
 0x27d   :  { %v315_v41 = vpop.f32.mrf.mxu0 }
 0x27e   :  { %319 = vst [vmem:[#allocation10] sm:$0xff] %v315_v41 }
 0x27f   :  { %v448_v42 = vpop.f32.mrf.mxu0 }
 0x280   :  { %549 = shalt.err (!%p546_p10)
}
 0x281   :  { %329 = dma.vmem_to_hbm [thread:$0]  %s327_s3, 128, %s658_s4, [#allocation4]  }
 0x282   :  { %564 = dma.done.wait [#allocation4], 128  }
 0x283   :  { %565 = vsyncadd [#allocation4], 4294967168 }
 0x284   :  { %333 = vsyncpa [#allocation3], 1 }
 0x285   :  { %334 = vsyncpa [#allocation6], 1 }
 0x286   :  { %335 = vsyncpa [#allocation9], 1 }
 0x287   :  { %336 = vsyncpa [#allocation4], 1 }

</bundles_post_ra>
